<compile_context>
chip_gen: v5e
topology: v5e:2x2
jax: 0.10.0
libtpu: 0.0.40
codegen_flags: <defaults>
</compile_context>

<pallas_src>
import functools

import jax
import jax.numpy as jnp
from jax.experimental import pallas as pl
from jax.experimental.pallas import tpu as pltpu

LANES = 128                              # TPU vreg lane width
_VMEM_TILE_BUDGET = 44 * 1024 * 1024     # stay well under v7x's 64 MiB physical VMEM


def gmf_kernel(u_ref, i_ref, w_ref, b_ref, o_ref):
    """One batch tile of the GMF forward pass.

    u_ref, i_ref : (tbp, 128)  lane-packed embeddings (P batch rows per vreg
                   row), f32 or bf16 (explicit upcast: v5e has no bf16 VPU).
    w_ref        : (128, P) f32  block-diagonal affine weight (folds the
                   D-reduce and the P-way de-interleave into one MXU op).
    b_ref        : (1, 1) f32    affine bias, SMEM scalar.
    o_ref        : (tbp, P) f32  sigmoid(logits); element (r,k) = batch row r*P+k.
    """
    prod = u_ref[...].astype(jnp.float32) * i_ref[...].astype(jnp.float32)  # VPU, all 128 lanes live
    logits = jnp.dot(prod, w_ref[...], preferred_element_type=jnp.float32)  # MXU block-diag reduce
    # NOTE(perf): this epilogue (EUP sigmoid + store) runs on (tbp, P) vregs
    # with only P/128 lanes live.  Today it hides under DMA slack; if HBM
    # traffic is cut further (fused gather / bf16 tables) re-profile before
    # "optimizing" it (write raw logits, or repack lane-dense, only if it
    # actually surfaces as the critical slot).
    o_ref[...] = jax.nn.sigmoid(logits + b_ref[0, 0])


def _round_up(x, m):
    return ((x + m - 1) // m) * m


@functools.partial(jax.jit, static_argnames=("tb", "io_dtype", "input_buffers"))
def gmf_forward(user_emb_table, item_emb_table, w, b, user_indices, item_indices,
                *, tb=32768, io_dtype=None, input_buffers=2):
    """GMF forward: sigmoid(Linear(user_emb[u] * item_emb[i])) -> (B, 1) f32.

    user_emb_table: (num_users, D) float
    item_emb_table: (num_items, D) float
    w:              (D, 1) f32   (PyTorch Linear weight, transposed)
    b:              scalar / (1,) / (1, 1) f32
    user_indices, item_indices: (B,) int32

    tb:            requested batch rows per grid step.  Auto-shrunk to fit the
                   VMEM budget and to give an even, >=2-step grid for v7x's
                   two TensorCores.
    io_dtype:      dtype of the gathered/packed embeddings fed to the kernel.
                   None keeps the table dtype; jnp.bfloat16 halves HBM bytes
                   for this memory-bound op (kernel upcasts to f32).
    input_buffers: pipeline depth for the two embedding streams.  2 = standard
                   double-buffering; set 3 on v7x (faster HBM makes the fixed
                   per-step latency relatively larger) after checking a trace.
    """
    D = user_emb_table.shape[1]
    assert LANES % D == 0, "latent_dim must divide 128 (e.g. 8/16/32/64/128)"
    P = LANES // D                        # batch rows packed per 128-lane vreg row
    B = user_indices.shape[0]

    if io_dtype is None:
        io_dtype = user_emb_table.dtype
    io_dtype = jnp.dtype(io_dtype)
    itemsize = io_dtype.itemsize
    sublane_mult = 8 * (4 // itemsize)    # native sublane tiling: f32 -> 8, bf16 -> 16
    pack_tile = sublane_mult * P          # batch rows per native (sublane, 128) tile

    # ---- batch-tile selection -------------------------------------------------
    # (a) round the requested tile to whole native tiles.
    tb = max(pack_tile, (tb // pack_tile) * pack_tile)

    # (b) shrink until {input_buffers} x 2 input tiles + 2 output tiles fit the
    #     VMEM budget (44 MiB: safe on v5e/v6e 128 MiB and v7x 64 MiB physical).
    def _vmem_need(tb_):
        in_tile = (tb_ // P) * LANES * itemsize
        out_tile = (tb_ // P) * P * 4
        return input_buffers * 2 * in_tile + 2 * out_tile + 2 * LANES * P * 4

    while tb > pack_tile and _vmem_need(tb) > _VMEM_TILE_BUDGET:
        tb = max(pack_tile, (tb // 2 // pack_tile) * pack_tile)

    # (c) never use a tile larger than the (padded) batch.
    tb = min(tb, _round_up(B, pack_tile))

    # (d) make the grid even and >= 2 where possible so v7x's two TensorCores
    #     split the "parallel" axis evenly (avoids e.g. a 2:1 lopsided grid).
    grid_n = pl.cdiv(B, tb)
    if grid_n == 1 and B > 2 * pack_tile:
        grid_n = 2
    elif grid_n > 1 and grid_n % 2 == 1:
        grid_n += 1
    tb = _round_up(pl.cdiv(B, grid_n), pack_tile)
    grid_n = pl.cdiv(_round_up(B, pack_tile), tb)
    B_pad = grid_n * tb

    if B_pad != B:
        pad = B_pad - B
        # Padded rows gather valid row 0 and are sliced off at the end.
        user_indices = jnp.pad(user_indices, (0, pad))
        item_indices = jnp.pad(item_indices, (0, pad))

    # ---- embedding gather (XLA glue; see TODO(synk) at top) --------------------
    u = jnp.take(user_emb_table, user_indices, axis=0).astype(io_dtype)    # (B_pad, D)
    it = jnp.take(item_emb_table, item_indices, axis=0).astype(io_dtype)   # (B_pad, D)

    # Lane packing: P consecutive batch rows per 128-lane row (contiguous
    # row-major reshape -> no data movement, fuses into the gather output).
    u_p = u.reshape(B_pad // P, LANES)
    i_p = it.reshape(B_pad // P, LANES)

    # Block-diagonal weight: W_blk[p*D + d, k] = w[d] if p == k else 0, so
    # (packed_prod @ W_blk)[r, k] = sum_d prod[batch r*P + k, d] * w[d].
    # Tiny (128 x P) constant; built under jit -> traced once per shape & cached.
    w_col = jnp.asarray(w, jnp.float32).reshape(D)
    w_blk = (jnp.eye(P, dtype=jnp.float32)[:, None, :]
             * w_col[None, :, None]).reshape(LANES, P)
    b_smem = jnp.asarray(b, jnp.float32).reshape(1, 1)

    Bp = B_pad // P
    tbp = tb // P

    # v5e's default scoped VMEM is only 16 MiB (v6e/v7x: 32 MiB) -- raise the
    # limit explicitly whenever the big tiles need it (harmless otherwise).
    vmem_limit = int(min(56 * 1024 * 1024,
                         max(32 * 1024 * 1024, _vmem_need(tb) + (4 << 20))))

    emb_kwargs = ({} if input_buffers == 2
                  else {"pipeline_mode": pl.Buffered(input_buffers)})

    out_packed = pl.pallas_call(
        gmf_kernel,
        out_shape=jax.ShapeDtypeStruct((Bp, P), jnp.float32),
        grid_spec=pltpu.PrefetchScalarGridSpec(
            num_scalar_prefetch=0,
            grid=(grid_n,),
            in_specs=[
                pl.BlockSpec((tbp, LANES), lambda i: (i, 0), **emb_kwargs),  # packed user emb
                pl.BlockSpec((tbp, LANES), lambda i: (i, 0), **emb_kwargs),  # packed item emb
                pl.BlockSpec((LANES, P), lambda i: (0, 0)),                  # block-diag weight (resident)
                pl.BlockSpec(memory_space=pltpu.MemorySpace.SMEM),           # bias scalar
            ],
            out_specs=pl.BlockSpec((tbp, P), lambda i: (i, 0)),
        ),
        compiler_params=pltpu.CompilerParams(
            dimension_semantics=("parallel",),
            vmem_limit_bytes=vmem_limit),
    )(u_p, i_p, w_blk, b_smem)

    # (Bp, P) row-major == (B_pad, 1): contiguous reshape, then drop padding.
    return out_packed.reshape(B_pad, 1)[:B]


def reference_forward(user_emb_table, item_emb_table, w, b, user_indices, item_indices):
    u = jnp.take(user_emb_table, user_indices, axis=0)
    it = jnp.take(item_emb_table, item_indices, axis=0)
    logits = (u * it) @ jnp.asarray(w, jnp.float32).reshape(-1, 1) \
        + jnp.asarray(b, jnp.float32).reshape(1, 1)
    return jax.nn.sigmoid(logits)


if __name__ == "__main__":
    # Small, deterministic configuration.  The tile-selection logic turns this
    # toy batch into an even grid of (2,) tiles (v7x megacore balance) and
    # exercises the ragged-padding path (1500 -> 1536).
    num_users, num_items, latent_dim, batch = 300, 500, 32, 1500

    key = jax.random.PRNGKey(0)
    k_u, k_i, k_w, k_b, k_ui, k_ii = jax.random.split(key, 6)

    user_emb_table = jax.random.normal(k_u, (num_users, latent_dim), jnp.float32)
    item_emb_table = jax.random.normal(k_i, (num_items, latent_dim), jnp.float32)
    # nn.Linear(latent_dim, 1): weight (1, latent_dim), bias (1,).  Store weight as (D, 1).
    w = jax.random.normal(k_w, (latent_dim, 1), jnp.float32) * 0.1
    b = jax.random.normal(k_b, (1, 1), jnp.float32) * 0.1

    user_indices = jax.random.randint(k_ui, (batch,), 0, num_users, jnp.int32)
    item_indices = jax.random.randint(k_ii, (batch,), 0, num_items, jnp.int32)

    out = gmf_forward(user_emb_table, item_emb_table, w, b,
                      user_indices, item_indices)          # defaults: auto tile, f32 I/O
    out = jax.block_until_ready(out)

    ref = reference_forward(user_emb_table, item_emb_table, w, b,
                            user_indices, item_indices)
    assert out.shape == (batch, 1), out.shape
    assert jnp.allclose(out, ref, atol=1e-5, rtol=1e-4), (out, ref)

    print("KERNEL_OK")
</pallas_src>

<mosaic_0001>
module attributes {stable_mosaic.version = 11 : i64} {
  func.func @gmf_kernel(%arg0: i32, %arg1: memref<192x128xf32, #tpu.memory_space<vmem>>, %arg2: memref<192x128xf32, #tpu.memory_space<vmem>>, %arg3: memref<128x4xf32, #tpu.memory_space<vmem>>, %arg4: memref<1x1xf32, #tpu.memory_space<smem>>, %arg5: memref<192x4xf32, #tpu.memory_space<vmem>>) attributes {dimension_semantics = [#tpu.dimension_semantics<parallel>], iteration_bounds = array<i64: 2>, scalar_prefetch = 0 : i64, scratch_operands = 0 : i64, tpu.core_type = #tpu.core_type<tc>, window_params = [{transform_indices = @transform_0, window_bounds = array<i64: 192, 128>}, {transform_indices = @transform_1, window_bounds = array<i64: 192, 128>}, {pipeline_mode = #tpu.pipeline_mode<synchronous>, transform_indices = @transform_2, window_bounds = array<i64: 128, 4>}, {transform_indices = @transform_3, window_bounds = array<i64: 1, 1>}, {transform_indices = @transform_4, window_bounds = array<i64: 192, 4>}]} {
    %c0 = arith.constant 0 : index
    %c0_0 = arith.constant 0 : index
    %0 = vector.load %arg1[%c0, %c0_0] : memref<192x128xf32, #tpu.memory_space<vmem>>, vector<192x128xf32>
    %c0_1 = arith.constant 0 : index
    %c0_2 = arith.constant 0 : index
    %1 = vector.load %arg2[%c0_1, %c0_2] : memref<192x128xf32, #tpu.memory_space<vmem>>, vector<192x128xf32>
    %2 = arith.mulf %0, %1 : vector<192x128xf32>
    %c0_3 = arith.constant 0 : index
    %c0_4 = arith.constant 0 : index
    %3 = vector.load %arg3[%c0_3, %c0_4] : memref<128x4xf32, #tpu.memory_space<vmem>>, vector<128x4xf32>
    %cst = arith.constant dense<0.000000e+00> : vector<192x4xf32>
    %4 = tpu.matmul %2, %3, %cst {dimension_numbers = #tpu.dot_dimension_numbers<[1], [0], [0], [1], [0, 0, 1, 1], [], []>} : vector<192x128xf32>, vector<128x4xf32>, vector<192x4xf32> -> vector<192x4xf32>
    %c0_5 = arith.constant 0 : index
    %c0_6 = arith.constant 0 : index
    %5 = memref.load %arg4[%c0_5, %c0_6] : memref<1x1xf32, #tpu.memory_space<smem>>
    %6 = vector.broadcast %5 : f32 to vector<192x4xf32>
    %7 = arith.addf %4, %6 : vector<192x4xf32>
    %8 = arith.negf %7 : vector<192x4xf32>
    %9 = math.exp %8 : vector<192x4xf32>
    %cst_7 = arith.constant 1.000000e+00 : f32
    %10 = vector.broadcast %cst_7 : f32 to vector<192x4xf32>
    %11 = arith.addf %10, %9 : vector<192x4xf32>
    %12 = arith.divf %10, %11 : vector<192x4xf32>
    %c0_8 = arith.constant 0 : index
    %c0_9 = arith.constant 0 : index
    %13 = vector.load %arg5[%c0_8, %c0_9] : memref<192x4xf32, #tpu.memory_space<vmem>>, vector<192x4xf32>
    tpu.vector_store %arg5[%c0_8, %c0_9], %12 {strides = array<i32>} : memref<192x4xf32, #tpu.memory_space<vmem>>, vector<192x4xf32>,
    return
  }
  func.func @transform_0(%arg0: i32) -> (i32, i32) {
    %c0_i32 = arith.constant 0 : i32
    %c0_i32_0 = arith.constant 0 : i32
    return %arg0, %c0_i32 : i32, i32
  }
  func.func @transform_1(%arg0: i32) -> (i32, i32) {
    %c0_i32 = arith.constant 0 : i32
    %c0_i32_0 = arith.constant 0 : i32
    return %arg0, %c0_i32 : i32, i32
  }
  func.func @transform_2(%arg0: i32) -> (i32, i32) {
    %c0_i32 = arith.constant 0 : i32
    %c0_i32_0 = arith.constant 0 : i32
    %c0_i32_1 = arith.constant 0 : i32
    return %c0_i32, %c0_i32_0 : i32, i32
  }
  func.func @transform_3(%arg0: i32) -> (i32, i32) {
    %c0_i32 = arith.constant 0 : i32
    %c0_i32_0 = arith.constant 0 : i32
    %c0_i32_1 = arith.constant 0 : i32
    return %c0_i32, %c0_i32_0 : i32, i32
  }
  func.func @transform_4(%arg0: i32) -> (i32, i32) {
    %c0_i32 = arith.constant 0 : i32
    %c0_i32_0 = arith.constant 0 : i32
    return %arg0, %c0_i32 : i32, i32
  }
}

</mosaic_0001>

<bundles_post_ra>
// kernel: gmf_forward.1
= control target key start
LH: loop header
LB: loop body
LE: loop exit
PB: predicated region body
PF: predicated region fallthrough
CT: control target
= control target key end

     0   :  { %s1174_s17 = smov 0   ;;  %s1687_s0 = inlined_call_operand.vmem [shape: f32[384,128], index: 0, kind: input, shape index: {}]   ;;  %s1688_s1 = inlined_call_operand.vmem [shape: f32[384,128], index: 1, kind: input, shape index: {}]   ;;  %s1689_s2 = inlined_call_operand.vmem [shape: f32[128,4], index: 2, kind: input, shape index: {}]   ;;  %s1690_s3 = inlined_call_operand.<no memory space> [shape: f32[1,1], index: 3, kind: input, shape index: {}]   ;;  %s1691_s4 = inlined_call_operand.vmem [shape: f32[384,4], index: 4, kind: output, shape index: {}]  }
   0x1   :  { %9 = sst [smem:[#allocation2]] %s1690_s3 }
   0x2 LB: > { %s952_s18 = sadd.s32 4294967295, %s1144_s17   ;;  %p956_p0 = scmp.ge.s32.totalorder %s1144_s17, 1  ;;  %s1144_s17 = sphi %s1174_s17, %s15_s17  }
   0x3   : > { %p175_p1 = scmp.lt.s32.totalorder %s1144_s17, 3 }
   0x5   : > { %p176_p2 = pnand %p956_p0, %p175_p1 }
   0x6   : > { %s206_s28 = smul.u32 (!%p176_p2), 24, %s952_s18  ;;  %s312_s6 = sld [smem:[#allocation2]] (!%p176_p2) }
   0x7   : > { %179 = sbr.rel (%p176_p2) target bundleno = 290 (0x122), region = 36 }
   0x8   : > { %p207_p3 = scmp.lt.s32.totalorder (!%p176_p2), %s206_s28, 47 }
   0xc   : > { %v311_v0 = vld [vmem:[%s1689_s2 + $0x78] sm:$0xff]  ;;  %v310_v1 = vld [vmem:[%s1689_s2 + $0x70] sm:$0xff]  ;;  %v309_v2 = vld [vmem:[%s1689_s2 + $0x68] sm:$0xff]  ;;  %s1725_s28 = smov (!%p207_p3, %s206_s28), 47  ;;  %vm859_vm1 = vcmask 31744  }
   0xd   : > { %314 = vmatpush.msra.mxu0 %v311_v0  ;;  %986 = vmatpush.msra.mxu1 %v311_v0  ;;  %v308_v3 = vld [vmem:[%s1689_s2 + $0x60] sm:$0xff]  ;;  %v307_v4 = vld [vmem:[%s1689_s2 + $0x58] sm:$0xff]  ;;  %v306_v5 = vld [vmem:[%s1689_s2 + $0x50] sm:$0xff]  ;;  %s1215_s15 = sshll.u32 %s1725_s28, 3 }
   0xe   : > { %987 = vmatpush.msra.mxu2 %v311_v0  ;;  %988 = vmatpush.msra.mxu3 %v311_v0  ;;  %v305_v6 = vld [vmem:[%s1689_s2 + $0x48] sm:$0xff]  ;;  %v304_v7 = vld [vmem:[%s1689_s2 + $0x40] sm:$0xff]  ;;  %v303_v8 = vld [vmem:[%s1689_s2 + $0x38] sm:$0xff]  ;;  %s1227_s22 = scalar_lea.vmem %s1687_s0, %s1215_s15  ;;  %s1233_s25 = scalar_lea.vmem %s1688_s1, %s1215_s15 }
   0xf   : > { %315 = vmatpush.msra.mxu0 %v310_v1  ;;  %989 = vmatpush.msra.mxu1 %v310_v1  ;;  %v302_v9 = vld [vmem:[%s1689_s2 + $0x30] sm:$0xff]  ;;  %v301_v10 = vld [vmem:[%s1689_s2 + $0x28] sm:$0xff]  ;;  %v300_v11 = vld [vmem:[%s1689_s2 + $0x20] sm:$0xff]  ;;  %s1347_s9 = scalar_lea.vmem %s1691_s4, %s1215_s15 }
  0x10   : > { %990 = vmatpush.msra.mxu2 %v310_v1  ;;  %991 = vmatpush.msra.mxu3 %v310_v1  ;;  %v299_v12 = vld [vmem:[%s1689_s2 + $0x18] sm:$0xff]  ;;  %v298_v13 = vld [vmem:[%s1689_s2 + $0x10] sm:$0xff]  ;;  %v297_v14 = vld [vmem:[%s1689_s2 + $0x8] sm:$0xff] }
  0x11   : > { %316 = vmatpush.msra.mxu0 %v309_v2  ;;  %992 = vmatpush.msra.mxu1 %v309_v2  ;;  %v224_v15 = vld [vmem:[%s1227_s22] sm:$0xff]  ;;  %v230_v17 = vld [vmem:[%s1227_s22 + $0x30] sm:$0xff]  ;;  %v225_v28 = vld [vmem:[%s1227_s22 + $0x8] sm:$0xff] }
  0x12   : > { %993 = vmatpush.msra.mxu2 %v309_v2  ;;  %994 = vmatpush.msra.mxu3 %v309_v2  ;;  %v248_v16 = vld [vmem:[%s1233_s25] sm:$0xff]  ;;  %v254_v18 = vld [vmem:[%s1233_s25 + $0x30] sm:$0xff]  ;;  %v249_v29 = vld [vmem:[%s1233_s25 + $0x8] sm:$0xff] }
  0x13   : > { %317 = vmatpush.msra.mxu0 %v308_v3  ;;  %995 = vmatpush.msra.mxu1 %v308_v3  ;;  %v236_v19 = vld [vmem:[%s1227_s22 + $0x60] sm:$0xff]  ;;  %v242_v21 = vld [vmem:[%s1227_s22 + $0x90] sm:$0xff]  ;;  %v272_v24 = vmul.f32 %v248_v16, %v224_v15  ;;  %v278_v25 = vmul.f32 %v254_v18, %v230_v17  ;;  %v231_v30 = vld [vmem:[%s1227_s22 + $0x38] sm:$0xff]  ;;  %v273_v36 = vmul.f32 %v249_v29, %v225_v28 }
  0x14   : > { %996 = vmatpush.msra.mxu2 %v308_v3  ;;  %997 = vmatpush.msra.mxu3 %v308_v3  ;;  %v260_v20 = vld [vmem:[%s1233_s25 + $0x60] sm:$0xff]  ;;  %v266_v22 = vld [vmem:[%s1233_s25 + $0x90] sm:$0xff]  ;;  %v255_v31 = vld [vmem:[%s1233_s25 + $0x38] sm:$0xff] }
  0x15   : > { %318 = vmatpush.msra.mxu0 %v307_v4  ;;  %998 = vmatpush.msra.mxu1 %v307_v4  ;;  %v296_v23 = vld [vmem:[%s1689_s2] sm:$0xff]  ;;  %v284_v26 = vmul.f32 %v260_v20, %v236_v19  ;;  %v290_v27 = vmul.f32 %v266_v22, %v242_v21  ;;  %v237_v32 = vld [vmem:[%s1227_s22 + $0x68] sm:$0xff]  ;;  %v243_v34 = vld [vmem:[%s1227_s22 + $0x98] sm:$0xff]  ;;  %v279_v37 = vmul.f32 %v255_v31, %v231_v30 }
  0x16   : > { %999 = vmatpush.msra.mxu2 %v307_v4  ;;  %1000 = vmatpush.msra.mxu3 %v307_v4  ;;  %v261_v33 = vld [vmem:[%s1233_s25 + $0x68] sm:$0xff]  ;;  %v267_v35 = vld [vmem:[%s1233_s25 + $0x98] sm:$0xff]  ;;  %v226_v40 = vld [vmem:[%s1227_s22 + $0x10] sm:$0xff] }
  0x17   : > { %319 = vmatpush.msra.mxu0 %v306_v5  ;;  %1001 = vmatpush.msra.mxu1 %v306_v5  ;;  %v285_v38 = vmul.f32 %v261_v33, %v237_v32  ;;  %v291_v39 = vmul.f32 %v267_v35, %v243_v34  ;;  %v250_v41 = vld [vmem:[%s1233_s25 + $0x10] sm:$0xff]  ;;  %v232_v42 = vld [vmem:[%s1227_s22 + $0x40] sm:$0xff]  ;;  %v227_v52 = vld [vmem:[%s1227_s22 + $0x18] sm:$0xff] }
  0x18   : > { %1002 = vmatpush.msra.mxu2 %v306_v5  ;;  %1003 = vmatpush.msra.mxu3 %v306_v5  ;;  %v256_v43 = vld [vmem:[%s1233_s25 + $0x40] sm:$0xff]  ;;  %v238_v44 = vld [vmem:[%s1227_s22 + $0x70] sm:$0xff]  ;;  %v274_v48 = vmul.f32 %v250_v41, %v226_v40  ;;  %v251_v53 = vld [vmem:[%s1233_s25 + $0x18] sm:$0xff] }
  0x19   : > { %320 = vmatpush.msra.mxu0 %v305_v6  ;;  %1004 = vmatpush.msra.mxu1 %v305_v6  ;;  %v262_v45 = vld [vmem:[%s1233_s25 + $0x70] sm:$0xff]  ;;  %v244_v46 = vld [vmem:[%s1227_s22 + $0xa0] sm:$0xff]  ;;  %v280_v49 = vmul.f32 %v256_v43, %v232_v42  ;;  %v233_v54 = vld [vmem:[%s1227_s22 + $0x48] sm:$0xff]  ;;  %v275_v60 = vmul.f32 %v251_v53, %v227_v52 }
  0x1a   : > { %1005 = vmatpush.msra.mxu2 %v305_v6  ;;  %1006 = vmatpush.msra.mxu3 %v305_v6  ;;  %v268_v47 = vld [vmem:[%s1233_s25 + $0xa0] sm:$0xff]  ;;  %v286_v50 = vmul.f32 %v262_v45, %v238_v44  ;;  %v257_v55 = vld [vmem:[%s1233_s25 + $0x48] sm:$0xff]  ;;  %v239_v56 = vld [vmem:[%s1227_s22 + $0x78] sm:$0xff] }
  0x1b   : > { %321 = vmatpush.msra.mxu0 %v304_v7  ;;  %1007 = vmatpush.msra.mxu1 %v304_v7  ;;  %v292_v51 = vmul.f32 %v268_v47, %v244_v46  ;;  %v263_v57 = vld [vmem:[%s1233_s25 + $0x78] sm:$0xff]  ;;  %v245_v58 = vld [vmem:[%s1227_s22 + $0xa8] sm:$0xff]  ;;  %v281_v61 = vmul.f32 %v257_v55, %v233_v54  ;;  %v228_v0 = vld [vmem:[%s1227_s22 + $0x20] sm:$0xff] }
  0x1c   : > { %1008 = vmatpush.msra.mxu2 %v304_v7  ;;  %1009 = vmatpush.msra.mxu3 %v304_v7  ;;  %v269_v59 = vld [vmem:[%s1233_s25 + $0xa8] sm:$0xff]  ;;  %v287_v62 = vmul.f32 %v263_v57, %v239_v56  ;;  %v252_v1 = vld [vmem:[%s1233_s25 + $0x20] sm:$0xff]  ;;  %v234_v2 = vld [vmem:[%s1227_s22 + $0x50] sm:$0xff] }
  0x1d   : > { %322 = vmatpush.msra.mxu0 %v303_v8  ;;  %1010 = vmatpush.msra.mxu1 %v303_v8  ;;  %v293_v63 = vmul.f32 %v269_v59, %v245_v58  ;;  %v258_v3 = vld [vmem:[%s1233_s25 + $0x50] sm:$0xff]  ;;  %v240_v4 = vld [vmem:[%s1227_s22 + $0x80] sm:$0xff]  ;;  %v259_v15 = vld [vmem:[%s1233_s25 + $0x58] sm:$0xff] }
  0x1e   : > { %1011 = vmatpush.msra.mxu2 %v303_v8  ;;  %1012 = vmatpush.msra.mxu3 %v303_v8  ;;  %v264_v5 = vld [vmem:[%s1233_s25 + $0x80] sm:$0xff]  ;;  %v246_v6 = vld [vmem:[%s1227_s22 + $0xb0] sm:$0xff]  ;;  %v276_v8 = vmul.f32 %v252_v1, %v228_v0  ;;  %v241_v16 = vld [vmem:[%s1227_s22 + $0x88] sm:$0xff] }
  0x1f   : > { %323 = vmatpush.msra.mxu0 %v302_v9  ;;  %1013 = vmatpush.msra.mxu1 %v302_v9  ;;  %v270_v7 = vld [vmem:[%s1233_s25 + $0xb0] sm:$0xff]  ;;  %v265_v17 = vld [vmem:[%s1233_s25 + $0x88] sm:$0xff]  ;;  %v247_v18 = vld [vmem:[%s1227_s22 + $0xb8] sm:$0xff] }
  0x20   : > { %1014 = vmatpush.msra.mxu2 %v302_v9  ;;  %1015 = vmatpush.msra.mxu3 %v302_v9  ;;  %v282_v9 = vmul.f32 %v258_v3, %v234_v2  ;;  %v271_v19 = vld [vmem:[%s1233_s25 + $0xb8] sm:$0xff]  ;;  %v289_v22 = vmul.f32 %v265_v17, %v241_v16 }
  0x21   : > { %324 = vmatpush.msra.mxu0 %v301_v10  ;;  %1016 = vmatpush.msra.mxu1 %v301_v10 }
  0x22   : > { %1017 = vmatpush.msra.mxu2 %v301_v10  ;;  %1018 = vmatpush.msra.mxu3 %v301_v10  ;;  %v288_v10 = vmul.f32 %v264_v5, %v240_v4 }
  0x23   : > { %325 = vmatpush.msra.mxu0 %v300_v11  ;;  %1019 = vmatpush.msra.mxu1 %v300_v11 }
  0x24   : > { %1020 = vmatpush.msra.mxu2 %v300_v11  ;;  %1021 = vmatpush.msra.mxu3 %v300_v11  ;;  %v294_v11 = vmul.f32 %v270_v7, %v246_v6 }
  0x25   : > { %326 = vmatpush.msra.mxu0 %v299_v12  ;;  %1022 = vmatpush.msra.mxu1 %v299_v12 }
  0x26   : > { %1023 = vmatpush.msra.mxu2 %v299_v12  ;;  %1024 = vmatpush.msra.mxu3 %v299_v12  ;;  %v229_v12 = vld [vmem:[%s1227_s22 + $0x28] sm:$0xff] }
  0x27   : > { %327 = vmatpush.msra.mxu0 %v298_v13  ;;  %1025 = vmatpush.msra.mxu1 %v298_v13 }
  0x28   : > { %1026 = vmatpush.msra.mxu2 %v298_v13  ;;  %1027 = vmatpush.msra.mxu3 %v298_v13  ;;  %v253_v13 = vld [vmem:[%s1233_s25 + $0x28] sm:$0xff] }
  0x29   : > { %328 = vmatpush.msra.mxu0 %v297_v14  ;;  %1028 = vmatpush.msra.mxu1 %v297_v14  ;;  %v277_v20 = vmul.f32 %v253_v13, %v229_v12 }
  0x2a   : > { %1029 = vmatpush.msra.mxu2 %v297_v14  ;;  %1030 = vmatpush.msra.mxu3 %v297_v14  ;;  %v235_v14 = vld [vmem:[%s1227_s22 + $0x58] sm:$0xff] }
  0x2b   : > { %329 = vmatpush.msra.mxu0 %v296_v23  ;;  %1031 = vmatpush.msra.mxu1 %v296_v23  ;;  %v283_v21 = vmul.f32 %v259_v15, %v235_v14 }
  0x2c   : > { %1032 = vmatpush.msra.mxu2 %v296_v23  ;;  %1033 = vmatpush.msra.mxu3 %v296_v23  ;;  %v295_v23 = vmul.f32 %v271_v19, %v247_v18 }
  0x2d   : > { %330 = vmatmul.f32.vlgmr.msra.gmra.mxu0 %v272_v24  ;;  %348 = vmatmul.f32.vlgmr.msra.gmra.mxu1 %v278_v25  ;;  %v1292_v24 = vstv %s312_s6 }
  0x2e   : > { %366 = vmatmul.f32.vlgmr.msra.gmra.mxu2 %v284_v26  ;;  %384 = vmatmul.f32.vlgmr.msra.gmra.mxu3 %v290_v27 }
  0x35   : > { %333 = vmatmul.f32.gmra.mxu0 %v273_v36  ;;  %351 = vmatmul.f32.gmra.mxu1 %v279_v37 }
  0x36   : > { %369 = vmatmul.f32.gmra.mxu2 %v285_v38  ;;  %387 = vmatmul.f32.gmra.mxu3 %v291_v39 }
  0x3d   : > { %336 = vmatmul.f32.gmra.mxu0 %v274_v48  ;;  %354 = vmatmul.f32.gmra.mxu1 %v280_v49 }
  0x3e   : > { %372 = vmatmul.f32.gmra.mxu2 %v286_v50  ;;  %390 = vmatmul.f32.gmra.mxu3 %v292_v51 }
  0x45   : > { %339 = vmatmul.f32.gmra.mxu0 %v275_v60  ;;  %357 = vmatmul.f32.gmra.mxu1 %v281_v61 }
  0x46   : > { %375 = vmatmul.f32.gmra.mxu2 %v287_v62  ;;  %393 = vmatmul.f32.gmra.mxu3 %v293_v63 }
  0x4d   : > { %342 = vmatmul.f32.gmra.mxu0 %v276_v8  ;;  %360 = vmatmul.f32.gmra.mxu1 %v282_v9 }
  0x4e   : > { %378 = vmatmul.f32.gmra.mxu2 %v288_v10  ;;  %396 = vmatmul.f32.gmra.mxu3 %v294_v11 }
  0x55   : > { %345 = vmatmul.f32.gmra.mxu0 %v277_v20  ;;  %363 = vmatmul.f32.gmra.mxu1 %v283_v21 }
  0x56   : > { %381 = vmatmul.f32.gmra.mxu2 %v289_v22  ;;  %399 = vmatmul.f32.gmra.mxu3 %v295_v23 }
  0xaa   : > { %v331_v25 = vpop.f32.mrf.mxu0  ;;  %v349_v26 = vpop.f32.mrf.mxu1 }
  0xab   : > { %v332_v27 = vadd.f32 %v331_v25, %v1292_v24  ;;  %v350_v28 = vadd.f32 %v349_v26, %v1292_v24 }
  0xad   : > { %v960_v29 = vmul.f32 -1.442695, %v332_v27  ;;  %v966_v30 = vmul.f32 -1.442695, %v350_v28 }
  0xaf   : > { %1042 = vpow2.f32 %v960_v29 }
  0xb0   : > { %1044 = vpow2.f32 %v966_v30 }
  0xb1   : > { %v367_v31 = vpop.f32.mrf.mxu2  ;;  %v385_v32 = vpop.f32.mrf.mxu3 }
  0xb2   : > { %v368_v33 = vadd.f32 %v367_v31, %v1292_v24  ;;  %v386_v34 = vadd.f32 %v385_v32, %v1292_v24  ;;  %v334_v35 = vpop.f32.mrf.mxu0  ;;  %v352_v36 = vpop.f32.mrf.mxu1 }
  0xb3   : > { %v335_v37 = vadd.f32 %v334_v35, %v1292_v24  ;;  %v353_v38 = vadd.f32 %v352_v36, %v1292_v24 }
  0xb4   : > { %v972_v39 = vmul.f32 -1.442695, %v368_v33  ;;  %v978_v40 = vmul.f32 -1.442695, %v386_v34 }
  0xb5   : > { %v1043_v41 = vpop.eup %1042  ;;  %v961_v44 = vmul.f32 -1.442695, %v335_v37  ;;  %v967_v46 = vmul.f32 -1.442695, %v353_v38 }
  0xb6   : > { %v1045_v42 = vpop.eup %1044  ;;  %v1300_v43 = vadd.f32 1.0, %v1043_v41  ;;  %1046 = vpow2.f32 %v972_v39 }
  0xb7   : > { %v1302_v45 = vadd.f32 1.0, %v1045_v42  ;;  %1048 = vpow2.f32 %v978_v40 }
  0xb8   : > { %1050 = vrcp.f32 %v1300_v43  ;;  %v508_v50 = vand.u32 2147483647, %v1300_v43  ;;  %v510_v51 = vand.u32 2147483648, %v1300_v43  ;;  %vm504_vm0 = vweird.f32 %v1300_v43 }
  0xb9   : > { %1052 = vrcp.f32 %v1302_v45  ;;  %v370_v47 = vpop.f32.mrf.mxu2  ;;  %v388_v48 = vpop.f32.mrf.mxu3  ;;  %v598_v54 = vand.u32 2147483647, %v1302_v45  ;;  %v600_v58 = vand.u32 2147483648, %v1302_v45  ;;  %vm594_vm2 = vweird.f32 %v1302_v45 }
  0xba   : > { %1054 = vpow2.f32 %v961_v44  ;;  %v371_v49 = vadd.f32 %v370_v47, %v1292_v24  ;;  %v337_v52 = vpop.f32.mrf.mxu0  ;;  %v389_v56 = vadd.f32 %v388_v48, %v1292_v24  ;;  %v355_v63 = vpop.f32.mrf.mxu1  ;;  %vm1320_vm3 = vcmp.eq.f32.partialorder %v508_v50, 8.507059e+37 }
  0xbb   : > { %1056 = vpow2.f32 %v967_v46  ;;  %v338_v62 = vadd.f32 %v337_v52, %v1292_v24  ;;  %v511_v3 = vor.u32 1.1754944e-38, %v510_v51  ;;  %vm1326_vm4 = vcmp.eq.f32.partialorder %v598_v54, 8.507059e+37 }
  0xbc   : > { %v1047_v53 = vpop.eup %1046  ;;  %v973_v55 = vmul.f32 -1.442695, %v371_v49  ;;  %v979_v7 = vmul.f32 -1.442695, %v389_v56  ;;  %v601_v10 = vor.u32 1.1754944e-38, %v600_v58  ;;  %v356_v11 = vadd.f32 %v355_v63, %v1292_v24 }
  0xbd   : > { %v1049_v57 = vpop.eup %1048  ;;  %v1312_v59 = vadd.f32 1.0, %v1047_v53  ;;  %v962_v14 = vmul.f32 -1.442695, %v338_v62 }
  0xbe   : > { %v1051_v60 = vpop.eup %1050  ;;  %v1316_v61 = vadd.f32 1.0, %v1049_v57  ;;  %v1341_v25 = vmul.f32 -1.442695, %v356_v11 }
  0xbf   : > { %v1053_v0 = vpop.eup %1052  ;;  %v500_v1 = vmul.f32 %v1051_v60, %v1300_v43  ;;  %1058 = vrcp.f32 %v1312_v59  ;;  %vm505_vm5 = vweird.f32 %v1051_v60  ;;  %v688_v13 = vand.u32 2147483647, %v1312_v59 }
  0xc0   : > { %v1055_v4 = vpop.eup %1054  ;;  %v590_v5 = vmul.f32 %v1053_v0, %v1302_v45  ;;  %1060 = vpow2.f32 %v973_v55  ;;  %v690_v16 = vand.u32 2147483648, %v1312_v59  ;;  %vm595_vm6 = vweird.f32 %v1053_v0  ;;  %vm506_vm7 = vmor %vm504_vm0, %vm505_vm5 }
  0xc1   : > { %v1057_v8 = vpop.eup %1056  ;;  %v501_v9 = vsub.f32 1.0, %v500_v1  ;;  %1062 = vrcp.f32 %v1316_v61  ;;  %v1334_v17 = vadd.f32 1.0, %v1055_v4  ;;  %v778_v20 = vand.u32 2147483647, %v1316_v61  ;;  %v373_v29 = vpop.f32.mrf.mxu2  ;;  %vm596_vm10 = vmor %vm594_vm2, %vm595_vm6 }
  0xc2   : > { %v591_v12 = vsub.f32 1.0, %v590_v5  ;;  %v1336_v18 = vadd.f32 1.0, %v1057_v8  ;;  %1064 = vpow2.f32 %v979_v7  ;;  %v780_v23 = vand.u32 2147483648, %v1316_v61  ;;  %v391_v56 = vpop.f32.mrf.mxu3  ;;  %v340_v11 = vpop.f32.mrf.mxu0 }
  0xc3   : > { %v502_v15 = vmul.f32 %v1051_v60, %v501_v9  ;;  %1066 = vrcp.f32 %v1334_v17  ;;  %vm684_vm8 = vweird.f32 %v1312_v59  ;;  %vm774_vm9 = vweird.f32 %v1316_v61 }
  0xc4   : > { %v592_v19 = vmul.f32 %v1053_v0, %v591_v12  ;;  %vm1358_vm11 = vcmp.eq.f32.partialorder %v688_v13, 8.507059e+37  ;;  %v691_v33 = vor.u32 1.1754944e-38, %v690_v16  ;;  %1068 = vrcp.f32 %v1336_v18 }
  0xc5   : > { %v1059_v21 = vpop.eup %1058  ;;  %v503_v22 = vadd.f32 %v1051_v60, %v502_v15  ;;  %vm1366_vm12 = vcmp.eq.f32.partialorder %v778_v20, 8.507059e+37  ;;  %v781_v40 = vor.u32 1.1754944e-38, %v780_v23  ;;  %v523_v41 = vand.u32 2147483647, %v1334_v17 }
  0xc6   : > { %v1061_v26 = vpop.eup %1060  ;;  %v593_v27 = vadd.f32 %v1053_v0, %v592_v19  ;;  %v680_v28 = vmul.f32 %v1059_v21, %v1312_v59  ;;  %v374_v42 = vadd.f32 %v373_v29, %v1292_v24  ;;  %vm685_vm13 = vweird.f32 %v1059_v21  ;;  %v358_v29 = vpop.f32.mrf.mxu1 }
  0xc7   : > { %v1063_v30 = vpop.eup %1062  ;;  %v507_v31 = vsel %vm506_vm7, %v1051_v60, %v503_v22  ;;  %v1378_v46 = vadd.f32 1.0, %v1061_v26  ;;  %vm519_vm15 = vweird.f32 %v1334_v17  ;;  %v525_v48 = vand.u32 2147483648, %v1334_v17  ;;  %vm686_vm0 = vmor %vm684_vm8, %vm685_vm13 }
  0xc8   : > { %v512_v34 = vsel %vm1320_vm3, %v511_v3, %v507_v31  ;;  %v597_v35 = vsel %vm596_vm10, %v1053_v0, %v593_v27  ;;  %v681_v36 = vsub.f32 1.0, %v680_v28  ;;  %v770_v37 = vmul.f32 %v1063_v30, %v1316_v61  ;;  %v1065_v43 = vpop.eup %1064 }
  0xc9   : > { %860 = vst.msk [vmem:[%s1347_s9] sm:$0xff] %vm859_vm1, %v512_v34  ;;  %v602_v39 = vsel %vm1326_vm4, %v601_v10, %v597_v35  ;;  %v1067_v47 = vpop.eup %1066  ;;  %vm775_vm14 = vweird.f32 %v1063_v30  ;;  %1070 = vpow2.f32 %v962_v14  ;;  %v1383_v52 = vadd.f32 1.0, %v1065_v43 }
  0xca   : > { %866 = vst.msk [vmem:[%s1347_s9 + $0x30] sm:$0xff] %vm859_vm1, %v602_v39  ;;  %v682_v44 = vmul.f32 %v1059_v21, %v681_v36  ;;  %v771_v45 = vsub.f32 1.0, %v770_v37  ;;  %v515_v51 = vmul.f32 %v1067_v47, %v1334_v17  ;;  %v1069_v53 = vpop.eup %1068  ;;  %vm1387_vm2 = vcmp.eq.f32.partialorder %v523_v41, 8.507059e+37  ;;  %vm776_vm4 = vmor %vm774_vm9, %vm775_vm14 }
  0xcb   : > { %vm609_vm3 = vweird.f32 %v1336_v18  ;;  %v613_v55 = vand.u32 2147483647, %v1336_v18  ;;  %1072 = vrcp.f32 %v1378_v46  ;;  %v605_v62 = vmul.f32 %v1069_v53, %v1336_v18 }
  0xcc   : > { %v683_v49 = vadd.f32 %v1059_v21, %v682_v44  ;;  %v772_v50 = vmul.f32 %v1063_v30, %v771_v45  ;;  %v516_v60 = vsub.f32 1.0, %v515_v51  ;;  %vm520_vm5 = vweird.f32 %v1067_v47 }
  0xcd   : > { %v615_v63 = vand.u32 2147483648, %v1336_v18  ;;  %v703_v0 = vand.u32 2147483647, %v1378_v46  ;;  %v606_v3 = vsub.f32 1.0, %v605_v62  ;;  %1074 = vrcp.f32 %v1383_v52  ;;  %vm521_vm8 = vmor %vm519_vm15, %vm520_vm5 }
  0xce   : > { %v687_v57 = vsel %vm686_vm0, %v1059_v21, %v683_v49  ;;  %v773_v58 = vadd.f32 %v1063_v30, %v772_v50  ;;  %v517_v2 = vmul.f32 %v1067_v47, %v516_v60  ;;  %v526_v6 = vor.u32 1.1754944e-38, %v525_v48 }
  0xcf   : > { %v692_v59 = vsel %vm1358_vm11, %v691_v33, %v687_v57  ;;  %v1071_v4 = vpop.eup %1070  ;;  %vm1407_vm6 = vcmp.eq.f32.partialorder %v613_v55, 8.507059e+37  ;;  %v705_v7 = vand.u32 2147483648, %v1378_v46  ;;  %v607_v9 = vmul.f32 %v1069_v53, %v606_v3  ;;  %v394_v33 = vpop.f32.mrf.mxu3 }
  0xd0   : > { %872 = vst.msk [vmem:[%s1347_s9 + $0x60] sm:$0xff] %vm859_vm1, %v692_v59  ;;  %v777_v1 = vsel %vm776_vm4, %v1063_v30, %v773_v58  ;;  %v518_v8 = vadd.f32 %v1067_v47, %v517_v2  ;;  %vm610_vm7 = vweird.f32 %v1069_v53  ;;  %v1414_v10 = vadd.f32 1.0, %v1071_v4  ;;  %v376_v30 = vpop.f32.mrf.mxu2 }
  0xd1   : > { %v782_v5 = vsel %vm1366_vm12, %v781_v40, %v777_v1  ;;  %v1073_v12 = vpop.eup %1072  ;;  %v616_v13 = vor.u32 1.1754944e-38, %v615_v63  ;;  %vm699_vm9 = vweird.f32 %v1378_v46  ;;  %1076 = vpow2.f32 %v1341_v25  ;;  %vm611_vm11 = vmor %vm609_vm3, %vm610_vm7 }
  0xd2   : > { %878 = vst.msk [vmem:[%s1347_s9 + $0x90] sm:$0xff] %vm859_vm1, %v782_v5  ;;  %v974_v14 = vmul.f32 -1.442695, %v374_v42  ;;  %v522_v15 = vsel %vm521_vm8, %v1067_v47, %v518_v8  ;;  %v608_v16 = vadd.f32 %v1069_v53, %v607_v9  ;;  %v695_v19 = vmul.f32 %v1073_v12, %v1378_v46  ;;  %v343_v9 = vpop.f32.mrf.mxu0 }
  0xd3   : > { %vm1422_vm10 = vcmp.eq.f32.partialorder %v703_v0, 8.507059e+37  ;;  %v392_v21 = vadd.f32 %v391_v56, %v1292_v24  ;;  %v527_v17 = vsel %vm1387_vm2, %v526_v6, %v522_v15  ;;  %v706_v22 = vor.u32 1.1754944e-38, %v705_v7  ;;  %v1075_v25 = vpop.eup %1074 }
  0xd4   : > { %1078 = vrcp.f32 %v1414_v10  ;;  %v341_v23 = vadd.f32 %v340_v11, %v1292_v24  ;;  %861 = vst.msk [vmem:[%s1347_s9 + $0x8] sm:$0xff] %vm859_vm1, %v527_v17  ;;  %v612_v26 = vsel %vm611_vm11, %v1069_v53, %v608_v16  ;;  %v696_v27 = vsub.f32 1.0, %v695_v19 }
  0xd5   : > { %vm789_vm12 = vweird.f32 %v1383_v52  ;;  %v793_v28 = vand.u32 2147483647, %v1383_v52  ;;  %v617_v18 = vsel %vm1407_vm6, %v616_v13, %v612_v26  ;;  %v785_v31 = vmul.f32 %v1075_v25, %v1383_v52 }
  0xd6   : > { %v795_v32 = vand.u32 2147483648, %v1383_v52  ;;  %1080 = vpow2.f32 %v974_v14  ;;  %867 = vst.msk [vmem:[%s1347_s9 + $0x38] sm:$0xff] %vm859_vm1, %v617_v18  ;;  %v697_v34 = vmul.f32 %v1073_v12, %v696_v27  ;;  %vm700_vm13 = vweird.f32 %v1073_v12 }
  0xd7   : > { %vm790_vm14 = vweird.f32 %v1075_v25  ;;  %v980_v35 = vmul.f32 -1.442695, %v392_v21  ;;  %v1077_v36 = vpop.eup %1076  ;;  %v786_v37 = vsub.f32 1.0, %v785_v31  ;;  %v963_v38 = vmul.f32 -1.442695, %v341_v23  ;;  %vm701_vm15 = vmor %vm699_vm9, %vm700_vm13 }
  0xd8   : > { %v359_v39 = vadd.f32 %v358_v29, %v1292_v24  ;;  %v377_v40 = vadd.f32 %v376_v30, %v1292_v24  ;;  %v698_v41 = vadd.f32 %v1073_v12, %v697_v34  ;;  %v1446_v42 = vadd.f32 1.0, %v1077_v36  ;;  %vm791_vm3 = vmor %vm789_vm12, %vm790_vm14 }
  0xd9   : > { %1082 = vpow2.f32 %v980_v35  ;;  %v395_v43 = vadd.f32 %v394_v33, %v1292_v24  ;;  %v787_v45 = vmul.f32 %v1075_v25, %v786_v37  ;;  %vm1451_vm0 = vcmp.eq.f32.partialorder %v793_v28, 8.507059e+37 }
  0xda   : > { %v1079_v44 = vpop.eup %1078  ;;  %1084 = vpow2.f32 %v963_v38  ;;  %v969_v47 = vmul.f32 -1.442695, %v359_v39  ;;  %v975_v48 = vmul.f32 -1.442695, %v377_v40  ;;  %v702_v49 = vsel %vm701_vm15, %v1073_v12, %v698_v41 }
  0xdb   : > { %v530_v51 = vmul.f32 %v1079_v44, %v1414_v10  ;;  %1086 = vrcp.f32 %v1446_v42  ;;  %v707_v54 = vsel %vm1422_vm10, %v706_v22, %v702_v49  ;;  %v788_v55 = vadd.f32 %v1075_v25, %v787_v45 }
  0xdc   : > { %v1081_v53 = vpop.eup %1080  ;;  %v796_v46 = vor.u32 1.1754944e-38, %v795_v32  ;;  %vm534_vm2 = vweird.f32 %v1414_v10  ;;  %873 = vst.msk [vmem:[%s1347_s9 + $0x68] sm:$0xff] %vm859_vm1, %v707_v54  ;;  %v538_v57 = vand.u32 2147483647, %v1414_v10  ;;  %1088 = vpow2.f32 %v969_v47 }
  0xdd   : > { %v531_v56 = vsub.f32 1.0, %v530_v51  ;;  %v1466_v58 = vadd.f32 1.0, %v1081_v53  ;;  %v792_v60 = vsel %vm791_vm3, %v1075_v25, %v788_v55  ;;  %v540_v62 = vand.u32 2147483648, %v1414_v10 }
  0xde   : > { %1090 = vpow2.f32 %v975_v48  ;;  %v981_v59 = vmul.f32 -1.442695, %v395_v43  ;;  %v797_v0 = vsel %vm1451_vm0, %v796_v46, %v792_v60  ;;  %vm535_vm4 = vweird.f32 %v1079_v44 }
  0xdf   : > { %v1083_v63 = vpop.eup %1082  ;;  %v532_v1 = vmul.f32 %v1079_v44, %v531_v56  ;;  %1092 = vrcp.f32 %v1466_v58  ;;  %879 = vst.msk [vmem:[%s1347_s9 + $0x98] sm:$0xff] %vm859_vm1, %v797_v0  ;;  %v628_v2 = vand.u32 2147483647, %v1446_v42  ;;  %v630_v6 = vand.u32 2147483648, %v1446_v42  ;;  %vm536_vm5 = vmor %vm534_vm2, %vm535_vm4 }
  0xe0   : > { %v1085_v52 = vpop.eup %1084  ;;  %v1475_v3 = vadd.f32 1.0, %v1083_v63  ;;  %1094 = vpow2.f32 %v981_v59  ;;  %vm539_vm6 = vcmp.eq.f32.partialorder %v538_v57, 8.507059e+37  ;;  %v541_v7 = vor.u32 1.1754944e-38, %v540_v62  ;;  %v379_v57 = vpop.f32.mrf.mxu2 }
  0xe1   : > { %v1087_v4 = vpop.eup %1086  ;;  %v533_v5 = vadd.f32 %v1079_v44, %v532_v1  ;;  %v1478_v61 = vadd.f32 1.0, %v1085_v52  ;;  %v718_v13 = vand.u32 2147483647, %v1466_v58  ;;  %v720_v14 = vand.u32 2147483648, %v1466_v58 }
  0xe2   : > { %v620_v8 = vmul.f32 %v1087_v4, %v1446_v42  ;;  %v1089_v11 = vpop.eup %1088  ;;  %1096 = vrcp.f32 %v1475_v3  ;;  %vm624_vm7 = vweird.f32 %v1446_v42  ;;  %vm1490_vm8 = vcmp.eq.f32.partialorder %v628_v2, 8.507059e+37  ;;  %v361_v42 = vpop.f32.mrf.mxu1 }
  0xe3   : > { %v537_v12 = vsel %vm536_vm5, %v1079_v44, %v533_v5  ;;  %1098 = vrcp.f32 %v1478_v61  ;;  %v631_v21 = vor.u32 1.1754944e-38, %v630_v6  ;;  %vm714_vm9 = vweird.f32 %v1466_v58 }
  0xe4   : > { %v1091_v15 = vpop.eup %1090  ;;  %v542_v16 = vsel %vm539_vm6, %v541_v7, %v537_v12  ;;  %v621_v19 = vsub.f32 1.0, %v620_v8  ;;  %v344_v17 = vadd.f32 %v343_v9, %v1292_v24  ;;  %vm625_vm10 = vweird.f32 %v1087_v4 }
  0xe5   : > { %v1093_v10 = vpop.eup %1092  ;;  %862 = vst.msk [vmem:[%s1347_s9 + $0x10] sm:$0xff] %vm859_vm1, %v542_v16  ;;  %v808_v25 = vand.u32 2147483647, %v1475_v3  ;;  %vm1498_vm11 = vcmp.eq.f32.partialorder %v718_v13, 8.507059e+37  ;;  %v721_v28 = vor.u32 1.1754944e-38, %v720_v14  ;;  %v810_v29 = vand.u32 2147483648, %v1475_v3  ;;  %vm626_vm14 = vmor %vm624_vm7, %vm625_vm10  ;;  %v397_v14 = vpop.f32.mrf.mxu3 }
  0xe6   : > { %v622_v22 = vmul.f32 %v1087_v4, %v621_v19  ;;  %v710_v23 = vmul.f32 %v1093_v10, %v1466_v58  ;;  %v1095_v26 = vpop.eup %1094  ;;  %v1503_v30 = vadd.f32 1.0, %v1089_v11  ;;  %vm804_vm12 = vweird.f32 %v1475_v3 }
  0xe7   : > { %vm549_vm13 = vweird.f32 %v1478_v61  ;;  %v1507_v32 = vadd.f32 1.0, %v1091_v15  ;;  %vm715_vm15 = vweird.f32 %v1093_v10  ;;  %v553_v34 = vand.u32 2147483647, %v1478_v61  ;;  %v346_v15 = vpop.f32.mrf.mxu0 }
  0xe8   : > { %v623_v18 = vadd.f32 %v1087_v4, %v622_v22  ;;  %v711_v31 = vsub.f32 1.0, %v710_v23  ;;  %v1097_v33 = vpop.eup %1096  ;;  %v555_v35 = vand.u32 2147483648, %v1478_v61  ;;  %1100 = vrcp.f32 %v1503_v30  ;;  %vm716_vm2 = vmor %vm714_vm9, %vm715_vm15 }
  0xe9   : > { %v1099_v36 = vpop.eup %1098  ;;  %v800_v39 = vmul.f32 %v1097_v33, %v1475_v3  ;;  %vm1515_vm0 = vcmp.eq.f32.partialorder %v808_v25, 8.507059e+37  ;;  %v1519_v41 = vadd.f32 1.0, %v1095_v26  ;;  %v811_v44 = vor.u32 1.1754944e-38, %v810_v29 }
  0xea   : > { %v627_v37 = vsel %vm626_vm14, %v1087_v4, %v623_v18  ;;  %v712_v38 = vmul.f32 %v1093_v10, %v711_v31  ;;  %v545_v45 = vmul.f32 %v1099_v36, %v1478_v61  ;;  %v643_v47 = vand.u32 2147483647, %v1503_v30 }
  0xeb   : > { %v632_v43 = vsel %vm1490_vm8, %v631_v21, %v627_v37  ;;  %v801_v49 = vsub.f32 1.0, %v800_v39  ;;  %v645_v50 = vand.u32 2147483648, %v1503_v30  ;;  %1102 = vrcp.f32 %v1507_v32  ;;  %v364_v21 = vpop.f32.mrf.mxu1  ;;  %v382_v37 = vpop.f32.mrf.mxu2 }
  0xec   : > { %868 = vst.msk [vmem:[%s1347_s9 + $0x40] sm:$0xff] %vm859_vm1, %v632_v43  ;;  %v713_v48 = vadd.f32 %v1093_v10, %v712_v38  ;;  %v546_v51 = vsub.f32 1.0, %v545_v45  ;;  %vm1532_vm3 = vcmp.eq.f32.partialorder %v553_v34, 8.507059e+37  ;;  %v556_v54 = vor.u32 1.1754944e-38, %v555_v35 }
  0xed   : > { %v964_v55 = vmul.f32 -1.442695, %v344_v17  ;;  %v802_v56 = vmul.f32 %v1097_v33, %v801_v49  ;;  %vm805_vm4 = vweird.f32 %v1097_v33  ;;  %1104 = vrcp.f32 %v1519_v41  ;;  %v400_v53 = vpop.f32.mrf.mxu3 }
  0xee   : > { %v717_v46 = vsel %vm716_vm2, %v1093_v10, %v713_v48  ;;  %v1101_v60 = vpop.eup %1100  ;;  %v547_v58 = vmul.f32 %v1099_v36, %v546_v51  ;;  %vm550_vm5 = vweird.f32 %v1099_v36  ;;  %vm639_vm6 = vweird.f32 %v1503_v30  ;;  %vm806_vm8 = vmor %vm804_vm12, %vm805_vm4 }
  0xef   : > { %v722_v62 = vsel %vm1498_vm11, %v721_v28, %v717_v46  ;;  %v803_v59 = vadd.f32 %v1097_v33, %v802_v56  ;;  %v635_v63 = vmul.f32 %v1101_v60, %v1503_v30  ;;  %vm1543_vm7 = vcmp.eq.f32.partialorder %v643_v47, 8.507059e+37  ;;  %vm551_vm10 = vmor %vm549_vm13, %vm550_vm5 }
  0xf0   : > { %874 = vst.msk [vmem:[%s1347_s9 + $0x70] sm:$0xff] %vm859_vm1, %v722_v62  ;;  %v646_v1 = vor.u32 1.1754944e-38, %v645_v50  ;;  %v733_v52 = vand.u32 2147483647, %v1507_v32  ;;  %v548_v2 = vadd.f32 %v1099_v36, %v547_v58  ;;  %vm729_vm9 = vweird.f32 %v1507_v32 }
  0xf1   : > { %v735_v4 = vand.u32 2147483648, %v1507_v32  ;;  %1106 = vpow2.f32 %v964_v55  ;;  %v362_v5 = vadd.f32 %v361_v42, %v1292_v24  ;;  %v1103_v6 = vpop.eup %1102  ;;  %v807_v7 = vsel %vm806_vm8, %v1097_v33, %v803_v59 }
  0xf2   : > { %v636_v8 = vsub.f32 1.0, %v635_v63  ;;  %vm640_vm11 = vweird.f32 %v1101_v60  ;;  %v380_v3 = vadd.f32 %v379_v57, %v1292_v24  ;;  %v812_v9 = vsel %vm1515_vm0, %v811_v44, %v807_v7 }
  0xf3   : > { %v552_v11 = vsel %vm551_vm10, %v1099_v36, %v548_v2  ;;  %v725_v12 = vmul.f32 %v1103_v6, %v1507_v32  ;;  %vm819_vm12 = vweird.f32 %v1519_v41  ;;  %v823_v13 = vand.u32 2147483647, %v1519_v41  ;;  %v1105_v16 = vpop.eup %1104  ;;  %880 = vst.msk [vmem:[%s1347_s9 + $0xa0] sm:$0xff] %vm859_vm1, %v812_v9  ;;  %vm641_vm14 = vmor %vm639_vm6, %vm640_vm11 }
  0xf4   : > { %v557_v61 = vsel %vm1532_vm3, %v556_v54, %v552_v11  ;;  %v637_v19 = vmul.f32 %v1101_v60, %v636_v8  ;;  %v825_v10 = vand.u32 2147483648, %v1519_v41  ;;  %v970_v20 = vmul.f32 -1.442695, %v362_v5 }
  0xf5   : > { %863 = vst.msk [vmem:[%s1347_s9 + $0x18] sm:$0xff] %vm859_vm1, %v557_v61  ;;  %v726_v17 = vsub.f32 1.0, %v725_v12  ;;  %vm730_vm13 = vweird.f32 %v1103_v6  ;;  %v815_v22 = vmul.f32 %v1105_v16, %v1519_v41  ;;  %v976_v23 = vmul.f32 -1.442695, %v380_v3 }
  0xf6   : > { %v638_v25 = vadd.f32 %v1101_v60, %v637_v19  ;;  %1108 = vpow2.f32 %v970_v20  ;;  %v398_v26 = vadd.f32 %v397_v14, %v1292_v24  ;;  %v347_v27 = vadd.f32 %v346_v15, %v1292_v24  ;;  %vm731_vm0 = vmor %vm729_vm9, %vm730_vm13 }
  0xf7   : > { %v1107_v28 = vpop.eup %1106  ;;  %v727_v29 = vmul.f32 %v1103_v6, %v726_v17  ;;  %v816_v18 = vsub.f32 1.0, %v815_v22  ;;  %1110 = vpow2.f32 %v976_v23  ;;  %v365_v31 = vadd.f32 %v364_v21, %v1292_v24 }
  0xf8   : > { %v642_v33 = vsel %vm641_vm14, %v1101_v60, %v638_v25  ;;  %v1576_v34 = vadd.f32 1.0, %v1107_v28  ;;  %v982_v35 = vmul.f32 -1.442695, %v398_v26  ;;  %v965_v36 = vmul.f32 -1.442695, %v347_v27 }
  0xf9   : > { %v647_v38 = vsel %vm1543_vm7, %v646_v1, %v642_v33  ;;  %v728_v39 = vadd.f32 %v1103_v6, %v727_v29  ;;  %v817_v40 = vmul.f32 %v1105_v16, %v816_v18  ;;  %vm820_vm15 = vweird.f32 %v1105_v16 }
  0xfa   : > { %869 = vst.msk [vmem:[%s1347_s9 + $0x48] sm:$0xff] %vm859_vm1, %v647_v38  ;;  %vm734_vm2 = vcmp.eq.f32.partialorder %v733_v52, 8.507059e+37  ;;  %v736_v30 = vor.u32 1.1754944e-38, %v735_v4  ;;  %1112 = vrcp.f32 %v1576_v34  ;;  %v971_v42 = vmul.f32 -1.442695, %v365_v31  ;;  %vm821_vm3 = vmor %vm819_vm12, %vm820_vm15 }
  0xfb   : > { %v732_v43 = vsel %vm731_vm0, %v1103_v6, %v728_v39  ;;  %v818_v44 = vadd.f32 %v1105_v16, %v817_v40  ;;  %1114 = vpow2.f32 %v982_v35  ;;  %v383_v45 = vadd.f32 %v382_v37, %v1292_v24 }
  0xfc   : > { %v1109_v47 = vpop.eup %1108  ;;  %v737_v48 = vsel %vm734_vm2, %v736_v30, %v732_v43  ;;  %v826_v49 = vor.u32 1.1754944e-38, %v825_v10  ;;  %1116 = vpow2.f32 %v965_v36  ;;  %vm824_vm4 = vcmp.eq.f32.partialorder %v823_v13, 8.507059e+37 }
  0xfd   : > { %v1111_v32 = vpop.eup %1110  ;;  %875 = vst.msk [vmem:[%s1347_s9 + $0x78] sm:$0xff] %vm859_vm1, %v737_v48  ;;  %v822_v50 = vsel %vm821_vm3, %v1105_v16, %v818_v44  ;;  %v1591_v51 = vadd.f32 1.0, %v1109_v47  ;;  %1118 = vpow2.f32 %v971_v42  ;;  %v977_v46 = vmul.f32 -1.442695, %v383_v45 }
  0xfe   : > { %v827_v54 = vsel %vm824_vm4, %v826_v49, %v822_v50  ;;  %v1593_v55 = vadd.f32 1.0, %v1111_v32  ;;  %v568_v56 = vand.u32 2147483647, %v1576_v34  ;;  %v401_v57 = vadd.f32 %v400_v53, %v1292_v24 }
  0xff   : > { %881 = vst.msk [vmem:[%s1347_s9 + $0xa8] sm:$0xff] %vm859_vm1, %v827_v54  ;;  %1120 = vrcp.f32 %v1591_v51  ;;  %v570_v59 = vand.u32 2147483648, %v1576_v34  ;;  %vm564_vm5 = vweird.f32 %v1576_v34  ;;  %v658_v1 = vand.u32 2147483647, %v1591_v51 }
 0x100   : > { %v1113_v41 = vpop.eup %1112  ;;  %1122 = vrcp.f32 %v1593_v55  ;;  %vm1609_vm6 = vcmp.eq.f32.partialorder %v568_v56, 8.507059e+37  ;;  %v660_v24 = vand.u32 2147483648, %v1591_v51  ;;  %v983_v5 = vmul.f32 -1.442695, %v401_v57 }
 0x101   : > { %v1115_v60 = vpop.eup %1114  ;;  %v560_v62 = vmul.f32 %v1113_v41, %v1576_v34  ;;  %1124 = vpow2.f32 %v977_v46  ;;  %vm565_vm7 = vweird.f32 %v1113_v41  ;;  %v748_v8 = vand.u32 2147483647, %v1593_v55 }
 0x102   : > { %v1117_v58 = vpop.eup %1116  ;;  %v1603_v63 = vadd.f32 1.0, %v1115_v60  ;;  %v571_v9 = vor.u32 1.1754944e-38, %v570_v59  ;;  %vm654_vm8 = vweird.f32 %v1591_v51  ;;  %vm744_vm9 = vweird.f32 %v1593_v55  ;;  %vm566_vm11 = vmor %vm564_vm5, %vm565_vm7 }
 0x103   : > { %v561_v0 = vsub.f32 1.0, %v560_v62  ;;  %v1607_v52 = vadd.f32 1.0, %v1117_v58  ;;  %v1119_v2 = vpop.eup %1118  ;;  %vm1620_vm10 = vcmp.eq.f32.partialorder %v658_v1, 8.507059e+37  ;;  %v750_v15 = vand.u32 2147483648, %v1593_v55 }
 0x104   : > { %1126 = vrcp.f32 %v1603_v63  ;;  %v661_v19 = vor.u32 1.1754944e-38, %v660_v24  ;;  %v1628_v10 = vadd.f32 1.0, %v1119_v2  ;;  %vm1630_vm12 = vcmp.eq.f32.partialorder %v748_v8, 8.507059e+37 }
 0x105   : > { %v1121_v6 = vpop.eup %1120  ;;  %v562_v7 = vmul.f32 %v1113_v41, %v561_v0  ;;  %1128 = vrcp.f32 %v1607_v52  ;;  %v751_v29 = vor.u32 1.1754944e-38, %v750_v15  ;;  %vm834_vm15 = vweird.f32 %v1603_v63 }
 0x106   : > { %v1123_v3 = vpop.eup %1122  ;;  %v650_v11 = vmul.f32 %v1121_v6, %v1591_v51  ;;  %1130 = vpow2.f32 %v983_v5  ;;  %vm655_vm13 = vweird.f32 %v1121_v6  ;;  %v838_v33 = vand.u32 2147483647, %v1603_v63 }
 0x107   : > { %v563_v12 = vadd.f32 %v1113_v41, %v562_v7  ;;  %v740_v14 = vmul.f32 %v1123_v3, %v1593_v55  ;;  %v1125_v16 = vpop.eup %1124  ;;  %1132 = vrcp.f32 %v1628_v10  ;;  %vm745_vm14 = vweird.f32 %v1123_v3  ;;  %vm656_vm0 = vmor %vm654_vm8, %vm655_vm13 }
 0x108   : > { %v651_v61 = vsub.f32 1.0, %v650_v11  ;;  %v1634_v22 = vadd.f32 1.0, %v1125_v16  ;;  %v840_v37 = vand.u32 2147483648, %v1603_v63  ;;  %vm746_vm2 = vmor %vm744_vm9, %vm745_vm14  ;;  %v583_v30 = vand.u32 2147483647, %v1607_v52 }
 0x109   : > { %v567_v20 = vsel %vm566_vm11, %v1113_v41, %v563_v12  ;;  %v741_v21 = vsub.f32 1.0, %v740_v14  ;;  %v585_v42 = vand.u32 2147483648, %v1607_v52  ;;  %vm579_vm4 = vweird.f32 %v1607_v52 }
 0x10a   : > { %v1127_v23 = vpop.eup %1126  ;;  %v572_v25 = vsel %vm1609_vm6, %v571_v9, %v567_v20  ;;  %v652_v26 = vmul.f32 %v1121_v6, %v651_v61  ;;  %1134 = vrcp.f32 %v1634_v22  ;;  %vm839_vm6 = vcmp.eq.f32.partialorder %v838_v33, 8.507059e+37 }
 0x10b   : > { %v1129_v27 = vpop.eup %1128  ;;  %864 = vst.msk [vmem:[%s1347_s9 + $0x20] sm:$0xff] %vm859_vm1, %v572_v25  ;;  %v742_v28 = vmul.f32 %v1123_v3, %v741_v21  ;;  %v830_v18 = vmul.f32 %v1127_v23, %v1603_v63  ;;  %vm835_vm3 = vweird.f32 %v1127_v23  ;;  %v841_v53 = vor.u32 1.1754944e-38, %v840_v37 }
 0x10c   : > { %v653_v31 = vadd.f32 %v1121_v6, %v652_v26  ;;  %v575_v34 = vmul.f32 %v1129_v27, %v1607_v52  ;;  %v1131_v38 = vpop.eup %1130  ;;  %vm580_vm5 = vweird.f32 %v1129_v27  ;;  %vm836_vm7 = vmor %vm834_vm15, %vm835_vm3  ;;  %vm584_vm8 = vcmp.eq.f32.partialorder %v583_v30, 8.507059e+37 }
 0x10d   : > { %v743_v35 = vadd.f32 %v1123_v3, %v742_v28  ;;  %v831_v36 = vsub.f32 1.0, %v830_v18  ;;  %v1133_v47 = vpop.eup %1132  ;;  %v498_v51 = vadd.f32 1.0, %v1131_v38  ;;  %v586_v55 = vor.u32 1.1754944e-38, %v585_v42  ;;  %vm581_vm9 = vmor %vm579_vm4, %vm580_vm5 }
 0x10e   : > { %v657_v39 = vsel %vm656_vm0, %v1121_v6, %v653_v31  ;;  %v576_v40 = vsub.f32 1.0, %v575_v34  ;;  %v665_v50 = vmul.f32 %v1133_v47, %v1628_v10  ;;  %v675_v62 = vand.u32 2147483648, %v1628_v10 }
 0x10f   : > { %v662_v43 = vsel %vm1620_vm10, %v661_v19, %v657_v39  ;;  %v747_v44 = vsel %vm746_vm2, %v1123_v3, %v743_v35  ;;  %v832_v45 = vmul.f32 %v1127_v23, %v831_v36  ;;  %vm669_vm10 = vweird.f32 %v1628_v10 }
 0x110   : > { %870 = vst.msk [vmem:[%s1347_s9 + $0x50] sm:$0xff] %vm859_vm1, %v662_v43  ;;  %v752_v48 = vsel %vm1630_vm12, %v751_v29, %v747_v44  ;;  %v577_v49 = vmul.f32 %v1129_v27, %v576_v40  ;;  %v1135_v46 = vpop.eup %1134  ;;  %v666_v56 = vsub.f32 1.0, %v665_v50  ;;  %1136 = vrcp.f32 %v498_v51 }
 0x111   : > { %876 = vst.msk [vmem:[%s1347_s9 + $0x80] sm:$0xff] %vm859_vm1, %v752_v48  ;;  %v833_v32 = vadd.f32 %v1127_v23, %v832_v45  ;;  %v755_v58 = vmul.f32 %v1135_v46, %v1634_v22  ;;  %vm670_vm11 = vweird.f32 %v1133_v47  ;;  %v673_v0 = vand.u32 2147483647, %v1628_v10 }
 0x112   : > { %v578_v54 = vadd.f32 %v1129_v27, %v577_v49  ;;  %v667_v63 = vmul.f32 %v1133_v47, %v666_v56  ;;  %v765_v2 = vand.u32 2147483648, %v1634_v22  ;;  %vm671_vm12 = vmor %vm669_vm10, %vm670_vm11  ;;  %v676_v4 = vor.u32 1.1754944e-38, %v675_v62 }
 0x113   : > { %v837_v41 = vsel %vm836_vm7, %v1127_v23, %v833_v32  ;;  %v756_v1 = vsub.f32 1.0, %v755_v58  ;;  %vm760_vm13 = vweird.f32 %v1135_v46  ;;  %v763_v5 = vand.u32 2147483647, %v1634_v22 }
 0x114   : > { %v842_v57 = vsel %vm839_vm6, %v841_v53, %v837_v41  ;;  %v582_v60 = vsel %vm581_vm9, %v1129_v27, %v578_v54  ;;  %v668_v52 = vadd.f32 %v1133_v47, %v667_v63  ;;  %vm674_vm14 = vcmp.eq.f32.partialorder %v673_v0, 8.507059e+37 }
 0x115   : > { %882 = vst.msk [vmem:[%s1347_s9 + $0xb0] sm:$0xff] %vm859_vm1, %v842_v57  ;;  %v587_v59 = vsel %vm584_vm8, %v586_v55, %v582_v60  ;;  %v757_v24 = vmul.f32 %v1135_v46, %v756_v1  ;;  %vm759_vm15 = vweird.f32 %v1634_v22  ;;  %v766_v11 = vor.u32 1.1754944e-38, %v765_v2 }
 0x116   : > { %865 = vst.msk [vmem:[%s1347_s9 + $0x28] sm:$0xff] %vm859_vm1, %v587_v59  ;;  %v1137_v6 = vpop.eup %1136  ;;  %v672_v7 = vsel %vm671_vm12, %v1133_v47, %v668_v52  ;;  %vm761_vm0 = vmor %vm759_vm15, %vm760_vm13  ;;  %vm764_vm2 = vcmp.eq.f32.partialorder %v763_v5, 8.507059e+37  ;;  %v855_v15 = vand.u32 2147483648, %v498_v51  ;;  %v853_v61 = vand.u32 2147483647, %v498_v51 }
 0x117   : > { %v677_v8 = vsel %vm674_vm14, %v676_v4, %v672_v7  ;;  %v758_v3 = vadd.f32 %v1135_v46, %v757_v24  ;;  %v845_v9 = vmul.f32 %v1137_v6, %v498_v51  ;;  %vm850_vm3 = vweird.f32 %v1137_v6 }
 0x118   : > { %871 = vst.msk [vmem:[%s1347_s9 + $0x58] sm:$0xff] %vm859_vm1, %v677_v8  ;;  %vm849_vm4 = vweird.f32 %v498_v51  ;;  %v856_v10 = vor.u32 1.1754944e-38, %v855_v15  ;;  %vm854_vm6 = vcmp.eq.f32.partialorder %v853_v61, 8.507059e+37 }
 0x119   : > { %v762_v12 = vsel %vm761_vm0, %v1135_v46, %v758_v3  ;;  %v846_v13 = vsub.f32 1.0, %v845_v9  ;;  %vm851_vm5 = vmor %vm849_vm4, %vm850_vm3 }
 0x11a   : > { %v767_v14 = vsel %vm764_vm2, %v766_v11, %v762_v12 }
 0x11b   : > { %877 = vst.msk [vmem:[%s1347_s9 + $0x88] sm:$0xff] %vm859_vm1, %v767_v14  ;;  %v847_v16 = vmul.f32 %v1137_v6, %v846_v13 }
 0x11d   : > { %v848_v19 = vadd.f32 %v1137_v6, %v847_v16 }
 0x11f   : > { %v852_v20 = vsel %vm851_vm5, %v1137_v6, %v848_v19 }
 0x120   : > { %v857_v21 = vsel %vm854_vm6, %v856_v10, %v852_v20 }
 0x121   : > { %883 = vst.msk [vmem:[%s1347_s9 + $0xb8] sm:$0xff] %vm859_vm1, %v857_v21 }
 0x122 PF: > { %s15_s17 = sadd.s32 1, %s1144_s17  }
 0x123   : > { %p12_p4 = scmp.ge.s32.totalorder %s15_s17, 4  }
 0x125   :  { %14 = sbr.rel (!%p12_p4) target bundleno = 2 (0x2), region = 69 }

</bundles_post_ra>
